<compile_context>
chip_gen: v5e
topology: v5e:2x2
jax: 0.10.0
libtpu: 0.0.40
codegen_flags: <defaults>
</compile_context>

<pallas_src>
import jax
import jax.numpy as jnp
from jax.experimental import pallas as pl
from jax.experimental.pallas import tpu as pltpu

LANE = 128
MAX_TILE_ROWS = 4096  # 4096 x 128 x 4B = 2 MiB per f32 block


def _lsq_kernel(s_ref, x_ref, o_ref, *, qn, qp):
    # s_ref: (1,) scalar step size in SMEM (f32)
    # x_ref/o_ref: (tile_rows, 128) VMEM tiles in the tensor's native dtype
    s = s_ref[0]
    x = x_ref[...].astype(jnp.float32)
    xq = x / s                      # true division: matches torch / reference rounding
    xq = jnp.clip(xq, qn, qp)
    x_bar = jnp.round(xq)           # round-half-to-even, matches torch.round
    o_ref[...] = (x_bar * s).astype(o_ref.dtype)


def lsq_quantize(x, s, bits, is_activation=False):
    """LSQ forward: round(clamp(x/s, Qn, Qp)) * s, elementwise.

    x: any-shape float array (e.g. NCHW activations), kept in its native dtype.
    s: scalar step size (shape () or (1,)).
    """
    if is_activation:
        qn = 0.0
        qp = float(2 ** bits - 1)
    else:
        qn = float(-(2 ** (bits - 1)))
        qp = float(2 ** (bits - 1) - 1)

    orig_shape = x.shape
    orig_dtype = x.dtype
    n = x.size

    # Flatten; pad only to a multiple of LANE (the (8,128) rule applies to the
    # block shape, not the array, and a full-array block or cdiv partial block
    # handles any row count). Skip the pad entirely when already aligned.
    xf = jnp.ravel(x)
    rem = n % LANE
    if rem != 0:
        xf = jnp.pad(xf, (0, LANE - rem))
    rows = xf.size // LANE
    x2d = xf.reshape(rows, LANE)

    # Tiling: single full-array block for small inputs (always layout-legal),
    # otherwise large 4096-row blocks with a cdiv grid (partial last block ok:
    # elementwise math on padded reads, OOB writes dropped).
    if rows <= MAX_TILE_ROWS:
        tile_rows = rows
        grid = (1,)
    else:
        tile_rows = MAX_TILE_ROWS
        grid = (pl.cdiv(rows, tile_rows),)

    s_arr = jnp.asarray(s, dtype=jnp.float32).reshape(1)

    kernel = lambda s_ref, x_ref, o_ref: _lsq_kernel(s_ref, x_ref, o_ref, qn=qn, qp=qp)

    out2d = pl.pallas_call(
        kernel,
        out_shape=jax.ShapeDtypeStruct((rows, LANE), orig_dtype),
        grid_spec=pltpu.PrefetchScalarGridSpec(
            num_scalar_prefetch=0,
            grid=grid,
            in_specs=[
                pl.BlockSpec(memory_space=pltpu.SMEM),              # s (scalar)
                pl.BlockSpec((tile_rows, LANE), lambda i: (i, 0)),  # x tile
            ],
            out_specs=pl.BlockSpec((tile_rows, LANE), lambda i: (i, 0)),
        ),
        compiler_params=pltpu.CompilerParams(
            dimension_semantics=("parallel",),
        ),
    )(s_arr, x2d)

    out = out2d.reshape(-1)
    if rem != 0:
        out = out[:n]
    return out.reshape(orig_shape)


def lsq_reference(x, s, bits, is_activation=False):
    """Pure-JAX reference mirroring the PyTorch forward (compute in f32)."""
    if is_activation:
        qn, qp = 0.0, float(2 ** bits - 1)
    else:
        qn, qp = float(-(2 ** (bits - 1))), float(2 ** (bits - 1) - 1)
    scale = jnp.asarray(s, jnp.float32).reshape(())
    xq = jnp.clip(x.astype(jnp.float32) / scale, qn, qp)
    return (jnp.round(xq) * scale).astype(x.dtype)


if __name__ == "__main__":
    key = jax.random.PRNGKey(0)
    # NCHW activation-like input
    x = jax.random.normal(key, (2, 4, 16, 16), dtype=jnp.float32)

    bits = 4
    is_activation = False
    qp = 2 ** (bits - 1) - 1
    # Deterministic parameter init mirroring init_step_size(x):
    # s = mean(|x|) * 2 / sqrt(Qp)
    s = jnp.mean(jnp.abs(x)) * 2.0 / (qp ** 0.5)

    out = lsq_quantize(x, s, bits, is_activation=is_activation)
    out = jax.block_until_ready(out)

    ref = lsq_reference(x, s, bits, is_activation=is_activation)
    assert out.shape == x.shape and out.dtype == x.dtype
    assert jnp.allclose(out, ref, atol=1e-6, rtol=1e-6), "fp32 mismatch vs reference"

    # bf16 path: native dtype kept end-to-end through HBM, f32 compute in-kernel.
    xb = x.astype(jnp.bfloat16)
    outb = jax.block_until_ready(lsq_quantize(xb, s, bits, is_activation=is_activation))
    refb = lsq_reference(xb, s, bits, is_activation=is_activation)
    assert outb.shape == xb.shape and outb.dtype == jnp.bfloat16
    assert jnp.allclose(outb.astype(jnp.float32), refb.astype(jnp.float32),
                        atol=1e-2, rtol=1e-2), "bf16 mismatch vs reference"

    print("KERNEL_OK")
</pallas_src>

<mosaic_0001>
module attributes {stable_mosaic.version = 11 : i64} {
  func.func @_lambda_(%arg0: i32, %arg1: memref<1xf32, #tpu.memory_space<smem>>, %arg2: memref<16x128xf32, #tpu.memory_space<vmem>>, %arg3: memref<16x128xf32, #tpu.memory_space<vmem>>) attributes {dimension_semantics = [#tpu.dimension_semantics<parallel>], iteration_bounds = array<i64: 1>, scalar_prefetch = 0 : i64, scratch_operands = 0 : i64, tpu.core_type = #tpu.core_type<tc>, window_params = [{transform_indices = @transform_0, window_bounds = array<i64: 1>}, {transform_indices = @transform_1, window_bounds = array<i64: 16, 128>}, {transform_indices = @transform_2, window_bounds = array<i64: 16, 128>}]} {
    %c0 = arith.constant 0 : index
    %0 = memref.load %arg1[%c0] : memref<1xf32, #tpu.memory_space<smem>>
    %c0_0 = arith.constant 0 : index
    %c0_1 = arith.constant 0 : index
    %1 = vector.load %arg2[%c0_0, %c0_1] : memref<16x128xf32, #tpu.memory_space<vmem>>, vector<16x128xf32>
    %2 = vector.broadcast %0 : f32 to vector<16x128xf32>
    %3 = arith.divf %1, %2 : vector<16x128xf32>
    %cst = arith.constant -8.000000e+00 : f32
    %cst_2 = arith.constant 7.000000e+00 : f32
    %4 = vector.broadcast %cst : f32 to vector<16x128xf32>
    %5 = arith.maximumf %4, %3 : vector<16x128xf32>
    %6 = vector.broadcast %cst_2 : f32 to vector<16x128xf32>
    %7 = arith.minimumf %6, %5 : vector<16x128xf32>
    %8 = math.roundeven %7 : vector<16x128xf32>
    %9 = vector.broadcast %0 : f32 to vector<16x128xf32>
    %10 = arith.mulf %8, %9 : vector<16x128xf32>
    %c0_3 = arith.constant 0 : index
    %c0_4 = arith.constant 0 : index
    %11 = vector.load %arg3[%c0_3, %c0_4] : memref<16x128xf32, #tpu.memory_space<vmem>>, vector<16x128xf32>
    tpu.vector_store %arg3[%c0_3, %c0_4], %10 {strides = array<i32>} : memref<16x128xf32, #tpu.memory_space<vmem>>, vector<16x128xf32>,
    return
  }
  func.func @transform_0(%arg0: i32) -> i32 {
    %c0_i32 = arith.constant 0 : i32
    %c0_i32_0 = arith.constant 0 : i32
    return %c0_i32 : i32
  }
  func.func @transform_1(%arg0: i32) -> (i32, i32) {
    %c0_i32 = arith.constant 0 : i32
    %c0_i32_0 = arith.constant 0 : i32
    return %arg0, %c0_i32 : i32, i32
  }
  func.func @transform_2(%arg0: i32) -> (i32, i32) {
    %c0_i32 = arith.constant 0 : i32
    %c0_i32_0 = arith.constant 0 : i32
    return %arg0, %c0_i32 : i32, i32
  }
}

</mosaic_0001>

<bundles_post_ra>
// kernel: tpu_custom_call.1
= control target key start
LH: loop header
LB: loop body
LE: loop exit
PB: predicated region body
PF: predicated region fallthrough
CT: control target
= control target key end

     0   :  { %8 = vsyncpa [#allocation4], 0  ;;  %s186_s0 = inlined_call_operand.<no memory space> [shape: f32[1], index: 0, kind: input, shape index: {}]   ;;  %s187_s1 = inlined_call_operand.hbm [shape: f32[16,128], index: 1, kind: input, shape index: {}]   ;;  %s188_s2 = inlined_call_operand.hbm [shape: f32[16,128], index: 2, kind: output, shape index: {}]  }
   0x1   :  { %9 = vsyncpa [#allocation5], 0  ;;  %s16_s11 = sshll.u32 %s187_s1, 4  ;;  %s152_s12 = smov [#allocation3]   ;;  %s17_s11 = int_to_ptr.hbm [resolvable:$true] %s16_s11 }
   0x2   :  { %s18_s13 = sshll.u32 %s152_s12, 4  ;;  %s153_s14 = smov 128   ;;  %s19_s13 = int_to_ptr.vmem [resolvable:$true] %s18_s13 }
   0x3   :  { %s154_s15 = smov 8  }
   0x4   :  { %24 = dma.hbm_to_vmem [thread:$0]  %s17_s11, 256, %s19_s13, [#allocation4], %s153_s14, %s153_s14, %s154_s15  }
   0x5   :  { %148 = dma.done.wait [#allocation4], 256  }
   0x6   :  { %149 = vsyncadd [#allocation4], 4294967040  ;;  %v32_v0 = vstv %s186_s0  ;;  %v30_v9 = vld [vmem:[#allocation3] sm:$0xff]  ;;  %v31_v10 = vld [vmem:[#allocation3 + $0x8] sm:$0xff]  ;;  %s155_s0 = smov [#allocation6]   ;;  %s65_s20 = sshll.u32 %s188_s2, 4  ;;  %s66_s20 = int_to_ptr.hbm [resolvable:$true] %s65_s20 }
   0x7   :  { %98 = vrcp.f32 %v32_v0  ;;  %v44_v3 = vand.u32 2147483648, %v32_v0  ;;  %vm38_vm0 = vweird.f32 %v32_v0  ;;  %v42_v5 = vand.u32 2147483647, %v32_v0  ;;  %s63_s1 = sshll.u32 %s155_s0, 4  ;;  %s64_s1 = int_to_ptr.vmem [resolvable:$true] %s63_s1 }
   0x9   :  { %v45_v7 = vor.u32 1.1754944e-38, %v44_v3  ;;  %vm43_vm3 = vcmp.eq.f32.partialorder %v42_v5, 8.507059e+37 }
   0xd   :  { %v99_v1 = vpop.eup %98 }
   0xe   :  { %v34_v2 = vmul.f32 %v99_v1, %v32_v0  ;;  %vm39_vm1 = vweird.f32 %v99_v1 }
   0xf   :  { %vm40_vm2 = vmor %vm38_vm0, %vm39_vm1 }
  0x10   :  { %v35_v4 = vsub.f32 1.0, %v34_v2 }
  0x12   :  { %v36_v6 = vmul.f32 %v99_v1, %v35_v4 }
  0x14   :  { %v37_v8 = vadd.f32 %v99_v1, %v36_v6 }
  0x16   :  { %v41_v11 = vsel %vm40_vm2, %v99_v1, %v37_v8 }
  0x17   :  { %v46_v12 = vsel %vm43_vm3, %v45_v7, %v41_v11 }
  0x18   :  { %v47_v13 = vmul.f32 %v46_v12, %v30_v9  ;;  %v48_v14 = vmul.f32 %v46_v12, %v31_v10 }
  0x1a   :  { %v49_v15 = vmax.f32 %v47_v13, -8.0  ;;  %v50_v16 = vmax.f32 %v48_v14, -8.0 }
  0x1c   :  { %v51_v17 = vmin.f32 %v49_v15, 7.0  ;;  %v52_v18 = vmin.f32 %v50_v16, 7.0 }
  0x1e   :  { %v80_v19 = vcvt.f32.s32 %v51_v17  ;;  %v78_v20 = vand.u32 2147483647, %v51_v17  ;;  %v88_v21 = vcvt.f32.s32 %v52_v18  ;;  %v83_v23 = vand.u32 2147483648, %v51_v17 }
  0x1f   :  { %v86_v24 = vand.u32 2147483647, %v52_v18  ;;  %v91_v26 = vand.u32 2147483648, %v52_v18 }
  0x20   :  { %v81_v22 = vcvt.s32.f32 %v80_v19  ;;  %v89_v25 = vcvt.s32.f32 %v88_v21  ;;  %vm79_vm4 = vcmp.lt.f32.partialorder %v78_v20, 8388608.0 }
  0x21   :  { %vm87_vm5 = vcmp.lt.f32.partialorder %v86_v24, 8388608.0 }
  0x22   :  { %v82_v27 = vand.u32 2147483647, %v81_v22  ;;  %v90_v28 = vand.u32 2147483647, %v89_v25 }
  0x24   :  { %v84_v29 = vor.u32 %v83_v23, %v82_v27  ;;  %v92_v30 = vor.u32 %v91_v26, %v90_v28 }
  0x26   :  { %v85_v31 = vsel %vm79_vm4, %v84_v29, %v51_v17  ;;  %v93_v33 = vsel %vm87_vm5, %v92_v30, %v52_v18 }
  0x27   :  { %v55_v32 = vmul.f32 %v85_v31, %v32_v0  ;;  %v56_v34 = vmul.f32 %v93_v33, %v32_v0 }
  0x29   :  { %57 = vst [vmem:[#allocation6] sm:$0xff] %v55_v32 }
  0x2a   :  { %58 = vst [vmem:[#allocation6 + $0x8] sm:$0xff] %v56_v34 }
  0x2b   :  { %71 = dma.vmem_to_hbm [thread:$0]  %s64_s1, 256, %s66_s20, [#allocation5], %s153_s14, %s153_s14, %s154_s15  }
  0x2c   :  { %150 = dma.done.wait [#allocation5], 256  }
  0x2d   :  { %151 = vsyncadd [#allocation5], 4294967040 }
  0x2e   :  { %76 = vsyncpa [#allocation4], 1 }
  0x2f   :  { %77 = vsyncpa [#allocation5], 1 }

</bundles_post_ra>
